<compile_context>
chip_gen: v7x
topology: tpu7x:2x2x1
jax: 0.10.0
libtpu: 0.0.40
codegen_flags: <defaults>
</compile_context>

<pallas_src>
import functools

import jax
import jax.numpy as jnp
from jax import lax
from jax.experimental import pallas as pl
from jax.experimental.pallas import tpu as pltpu

_MiB = 1 << 20


# --------------------------------------------------------------------------
# Kernels
# --------------------------------------------------------------------------
def _ln2d_fused_kernel(x_ref, scale_ref, offset_ref, o_ref, *, chunk_rows):
    """Whole-sample slab in VMEM; row-chunked sweeps bound f32 temporaries."""
    R, L = x_ref.shape
    n = R * L
    n_chunks = R // chunk_rows

    def load_chunk(c):
        r0 = pl.multiple_of(c * chunk_rows, chunk_rows)
        return r0, x_ref[pl.ds(r0, chunk_rows), :].astype(jnp.float32)

    # Sweep 1: mean.
    def sum_body(c, acc):
        _, xc = load_chunk(c)
        return acc + jnp.sum(xc)

    mean = lax.fori_loop(0, n_chunks, sum_body, jnp.zeros((), jnp.float32)) / n

    # Sweep 2: centered sum of squares (two-pass -> no catastrophic
    # cancellation; data is already resident in VMEM so this costs no HBM).
    def m2_body(c, acc):
        _, xc = load_chunk(c)
        d = xc - mean
        return acc + jnp.sum(d * d)

    m2 = lax.fori_loop(0, n_chunks, m2_body, jnp.zeros((), jnp.float32))
    inv_std = lax.rsqrt(m2 / (n - 1))  # unbiased, no eps (matches torch .std())

    # Sweep 3: fused normalize + affine, one chunk at a time.
    @pl.loop(0, n_chunks)
    def _(c):
        r0, xc = load_chunk(c)
        a = scale_ref[pl.ds(r0, chunk_rows), :] * inv_std       # (chunk, 1)
        b = offset_ref[pl.ds(r0, chunk_rows), :] - mean * a     # (chunk, 1)
        o_ref[pl.ds(r0, chunk_rows), :] = (xc * a + b).astype(o_ref.dtype)


def _ln2d_partial_kernel(x_ref, p_ref):
    """Phase 1 of the tiled path: per-tile mean and centered M2."""
    x = x_ref[...].astype(jnp.float32)          # (TR, L)
    cnt = x.shape[0] * x.shape[1]
    m = jnp.sum(x) / cnt
    d = x - m
    m2 = jnp.sum(d * d)
    p_ref[...] = jnp.concatenate(
        [jnp.full((1, 1, 128), m, jnp.float32),
         jnp.full((1, 1, 128), m2, jnp.float32)], axis=1)


def _ln2d_apply_kernel(x_ref, a_ref, b_ref, o_ref):
    """Phase 2 of the tiled path: out = x * a + b (per-row a, b)."""
    x = x_ref[...].astype(jnp.float32)
    o_ref[...] = (x * a_ref[...] + b_ref[...]).astype(o_ref.dtype)


# --------------------------------------------------------------------------
# Wrapper helpers
# --------------------------------------------------------------------------
def _vmem_budget():
    """(default scoped-VMEM limit, max scoped-VMEM we will request)."""
    try:
        vmem_cap = int(pltpu.get_tpu_info().vmem_capacity_bytes)
    except Exception:
        vmem_cap = 64 * _MiB  # conservative: v7x per-TensorCore VMEM
    # Scoped default: 16 MiB on v5e, 32 MiB on v6e/v7x. 128 MiB parts may be
    # either v5e or v6e, so assume the conservative 16 MiB there.
    default_scoped = 32 * _MiB if vmem_cap <= 64 * _MiB else 16 * _MiB
    # Leave >= 16 MiB of physical VMEM for Mosaic internal scratch and
    # temporaries (=> 48 MiB cap on v7x, 112 MiB on 128 MiB parts).
    max_scoped = vmem_cap - 16 * _MiB
    return default_scoped, max_scoped


def _divisor_rows(rows, target_rows):
    """Largest divisor of `rows` that is a multiple of 8 and <= target_rows.

    Falls back to `rows` itself (block == full dim is always legal)."""
    if rows <= target_rows:
        return rows
    best = None
    for d in range(1, int(rows ** 0.5) + 1):
        if rows % d:
            continue
        for cand in (d, rows // d):
            if cand <= target_rows and cand % 8 == 0 and (best is None or cand > best):
                best = cand
    return best if best is not None else rows


# --------------------------------------------------------------------------
# Public entry point
# --------------------------------------------------------------------------
def my_layernorm2d(x, scale, offset, *, force_tiled=False):
    """x: (N, C, H, W); scale/offset: (1, C, 1, 1) -- matches the PyTorch module."""
    N, C, H, W = x.shape
    HW = H * W
    n = C * HW

    # ---- Row packing: lane-dense (L % 128 == 0) whenever HW allows. L must
    # divide HW so each packed row stays inside a single channel.
    L = 128 if HW % 128 == 0 else HW
    R = n // L
    rep = HW // L  # rows per channel
    # TODO(synk): when HW % 128 != 0 and C % 8 != 0 the slab is lane- and
    # sublane-padded; cross-channel packing with per-element affine params
    # would fix it but is not implemented here.

    x_flat = x.reshape(N, R, L)
    scale_rows = jnp.repeat(scale.reshape(C).astype(jnp.float32), rep).reshape(R, 1)
    offset_rows = jnp.repeat(offset.reshape(C).astype(jnp.float32), rep).reshape(R, 1)

    default_scoped, max_scoped = _vmem_budget()
    itemsize = x.dtype.itemsize

    # Row chunk used both as the fused kernel's in-kernel chunk and the tiled
    # path's grid tile: ~2 MiB of f32, sublane aligned, divides R.
    target_rows = max(8, (2 * _MiB) // (L * 4))
    tile_rows = _divisor_rows(R, target_rows)

    # ---- VMEM accounting for the fused path: double-buffered in+out slabs,
    # chunk-sized f32 temporaries (upcast / centered / pre-cast result),
    # double-buffered affine rows, plus headroom.
    slab_bytes = R * L * itemsize
    fused_vmem = (4 * slab_bytes
                  + 3 * tile_rows * L * 4
                  + 4 * R * 4
                  + 2 * _MiB)
    use_fused = (not force_tiled) and fused_vmem <= max_scoped

    if use_fused:
        # NOTE: grid=(N,) only; for N=1 on v7x one TensorCore idles, but the
        # slab is <= ~46 MiB there so the loss is bounded (tiled path covers
        # everything larger and is 2-D parallel).
        compiler_kwargs = dict(dimension_semantics=("parallel",))
        if fused_vmem > default_scoped:
            compiler_kwargs["vmem_limit_bytes"] = int(min(fused_vmem, max_scoped))
        out_flat = pl.pallas_call(
            functools.partial(_ln2d_fused_kernel, chunk_rows=tile_rows),
            out_shape=jax.ShapeDtypeStruct((N, R, L), x.dtype),
            grid_spec=pltpu.PrefetchScalarGridSpec(
                num_scalar_prefetch=0,
                grid=(N,),
                in_specs=[
                    pl.BlockSpec((pl.Squeezed(), R, L), lambda i: (i, 0, 0)),
                    pl.BlockSpec((R, 1), lambda i: (0, 0)),
                    pl.BlockSpec((R, 1), lambda i: (0, 0)),
                ],
                out_specs=pl.BlockSpec((pl.Squeezed(), R, L), lambda i: (i, 0, 0)),
            ),
            compiler_params=pltpu.CompilerParams(**compiler_kwargs),
        )(x_flat, scale_rows, offset_rows)
        return out_flat.reshape(N, C, H, W)

    # ---------------- Tiled two-phase path (reduce -> combine -> apply) -------
    T = R // tile_rows
    tile_vmem = (4 * tile_rows * L * itemsize       # in + out, double-buffered
                 + 3 * tile_rows * L * 4            # f32 temporaries
                 + 4 * tile_rows * 4                # a/b rows, double-buffered
                 + 2 * _MiB)
    tiled_kwargs = dict(dimension_semantics=("parallel", "parallel"))
    if tile_vmem > default_scoped:
        tiled_kwargs["vmem_limit_bytes"] = int(min(tile_vmem, max_scoped))

    # Phase 1: per-tile (mean, centered M2) partials. Both axes parallel.
    partials = pl.pallas_call(
        _ln2d_partial_kernel,
        out_shape=jax.ShapeDtypeStruct((N, T, 2, 128), jnp.float32),
        grid_spec=pltpu.PrefetchScalarGridSpec(
            num_scalar_prefetch=0,
            grid=(N, T),
            in_specs=[pl.BlockSpec((pl.Squeezed(), tile_rows, L),
                                   lambda i, t: (i, t, 0))],
            out_specs=pl.BlockSpec((pl.Squeezed(), 1, 2, 128),
                                   lambda i, t: (i, t, 0, 0)),
        ),
        compiler_params=pltpu.CompilerParams(**tiled_kwargs),
    )(x_flat)

    # Combine partials (Chan's formula; all tiles have equal counts). Tiny.
    cnt = tile_rows * L
    m_t = partials[:, :, 0, 0]                                  # (N, T)
    m2_t = partials[:, :, 1, 0]                                 # (N, T)
    mean = jnp.mean(m_t, axis=1)                                # (N,)
    m2 = jnp.sum(m2_t, axis=1) + cnt * jnp.sum((m_t - mean[:, None]) ** 2, axis=1)
    inv_std = lax.rsqrt(m2 / (n - 1))                           # unbiased, no eps
    a_rows = scale_rows[None, :, :] * inv_std[:, None, None]          # (N, R, 1)
    b_rows = offset_rows[None, :, :] - mean[:, None, None] * a_rows   # (N, R, 1)

    # Phase 2: fused per-element FMA out = x * a + b. Both axes parallel.
    out_flat = pl.pallas_call(
        _ln2d_apply_kernel,
        out_shape=jax.ShapeDtypeStruct((N, R, L), x.dtype),
        grid_spec=pltpu.PrefetchScalarGridSpec(
            num_scalar_prefetch=0,
            grid=(N, T),
            in_specs=[
                pl.BlockSpec((pl.Squeezed(), tile_rows, L), lambda i, t: (i, t, 0)),
                pl.BlockSpec((pl.Squeezed(), tile_rows, 1), lambda i, t: (i, t, 0)),
                pl.BlockSpec((pl.Squeezed(), tile_rows, 1), lambda i, t: (i, t, 0)),
            ],
            out_specs=pl.BlockSpec((pl.Squeezed(), tile_rows, L),
                                   lambda i, t: (i, t, 0)),
        ),
        compiler_params=pltpu.CompilerParams(**tiled_kwargs),
    )(x_flat, a_rows, b_rows)

    return out_flat.reshape(N, C, H, W)


# --------------------------------------------------------------------------
if __name__ == "__main__":
    key = jax.random.PRNGKey(0)
    N, C, H, W = 2, 4, 16, 16
    # Non-zero DC offset exercises the two-pass variance numerics.
    x = jax.random.normal(key, (N, C, H, W), dtype=jnp.float32) * 1.5 + 3.0

    # Parameters exactly as the module's __init__ (ones / zeros).
    scale = jnp.ones((1, C, 1, 1), dtype=jnp.float32)
    offset = jnp.zeros((1, C, 1, 1), dtype=jnp.float32)

    # Pure-JAX reference (torch semantics: unbiased std over dims (-3,-2,-1)).
    mean = jnp.mean(x, axis=(-3, -2, -1), keepdims=True)
    var = jnp.sum((x - mean) ** 2, axis=(-3, -2, -1), keepdims=True) / (C * H * W - 1)
    ref = scale * ((x - mean) / jnp.sqrt(var)) + offset

    out_fused = jax.block_until_ready(my_layernorm2d(x, scale, offset))
    out_tiled = jax.block_until_ready(my_layernorm2d(x, scale, offset, force_tiled=True))

    assert jnp.allclose(out_fused, ref, atol=1e-5, rtol=1e-5), "fused path mismatch"
    assert jnp.allclose(out_tiled, ref, atol=1e-5, rtol=1e-5), "tiled path mismatch"

    print("KERNEL_OK")
</pallas_src>

<mosaic_0001>
module attributes {stable_mosaic.version = 11 : i64} {
  func.func @_ln2d_fused_kernel(%arg0: i32, %arg1: memref<1x8x128xf32, #tpu.memory_space<vmem>>, %arg2: memref<8x1xf32, #tpu.memory_space<vmem>>, %arg3: memref<8x1xf32, #tpu.memory_space<vmem>>, %arg4: memref<1x8x128xf32, #tpu.memory_space<vmem>>) attributes {dimension_semantics = [#tpu.dimension_semantics<parallel>], iteration_bounds = array<i64: 2>, scalar_prefetch = 0 : i64, scratch_operands = 0 : i64, tpu.core_type = #tpu.core_type<tc>, window_params = [{transform_indices = @transform_0, window_bounds = array<i64: 1, 8, 128>}, {pipeline_mode = #tpu.pipeline_mode<synchronous>, transform_indices = @transform_1, window_bounds = array<i64: 8, 1>}, {pipeline_mode = #tpu.pipeline_mode<synchronous>, transform_indices = @transform_2, window_bounds = array<i64: 8, 1>}, {transform_indices = @transform_3, window_bounds = array<i64: 1, 8, 128>}]} {
    %cst = arith.constant 0.000000e+00 : f32
    %c0_i32 = arith.constant 0 : i32
    %c8_i32 = arith.constant 8 : i32
    %0 = arith.muli %c0_i32, %c8_i32 : i32
    %1 = tpu.assume_multiple %0, 8 : i32
    %c0 = arith.constant 0 : index
    %2 = arith.index_cast %1 : i32 to index
    %c0_0 = arith.constant 0 : index
    %3 = vector.load %arg1[%c0, %2, %c0_0] : memref<1x8x128xf32, #tpu.memory_space<vmem>>, vector<1x8x128xf32>
    %4 = vector.shape_cast %3 : vector<1x8x128xf32> to vector<8x128xf32>
    %5 = vector.shape_cast %4 : vector<8x128xf32> to vector<1x8x128xf32>
    %cst_1 = arith.constant dense<0.000000e+00> : vector<1xf32>
    %6 = vector.multi_reduction <add>, %5, %cst_1 [1, 2] : vector<1x8x128xf32> to vector<1xf32>
    %7 = vector.shape_cast %6 : vector<1xf32> to vector<1x1x1xf32>
    %8 = vector.extract %7[0, 0, 0] : f32 from vector<1x1x1xf32>
    %9 = arith.addf %cst, %8 : f32
    %c1_i32 = arith.constant 1 : i32
    %cst_2 = arith.constant 1.024000e+03 : f32
    %10 = arith.divf %9, %cst_2 : f32
    %cst_3 = arith.constant 0.000000e+00 : f32
    %c0_i32_4 = arith.constant 0 : i32
    %c8_i32_5 = arith.constant 8 : i32
    %11 = arith.muli %c0_i32_4, %c8_i32_5 : i32
    %12 = tpu.assume_multiple %11, 8 : i32
    %c0_6 = arith.constant 0 : index
    %13 = arith.index_cast %12 : i32 to index
    %c0_7 = arith.constant 0 : index
    %14 = vector.load %arg1[%c0_6, %13, %c0_7] : memref<1x8x128xf32, #tpu.memory_space<vmem>>, vector<1x8x128xf32>
    %15 = vector.shape_cast %14 : vector<1x8x128xf32> to vector<8x128xf32>
    %16 = vector.broadcast %10 : f32 to vector<8x128xf32>
    %17 = arith.subf %15, %16 : vector<8x128xf32>
    %18 = arith.mulf %17, %17 : vector<8x128xf32>
    %19 = vector.shape_cast %18 : vector<8x128xf32> to vector<1x8x128xf32>
    %cst_8 = arith.constant dense<0.000000e+00> : vector<1xf32>
    %20 = vector.multi_reduction <add>, %19, %cst_8 [1, 2] : vector<1x8x128xf32> to vector<1xf32>
    %21 = vector.shape_cast %20 : vector<1xf32> to vector<1x1x1xf32>
    %22 = vector.extract %21[0, 0, 0] : f32 from vector<1x1x1xf32>
    %23 = arith.addf %cst_3, %22 : f32
    %c1_i32_9 = arith.constant 1 : i32
    %cst_10 = arith.constant 1.023000e+03 : f32
    %24 = arith.divf %23, %cst_10 : f32
    %25 = math.rsqrt %24 : f32
    %c0_i32_11 = arith.constant 0 : i32
    %c1_i32_12 = arith.constant 1 : i32
    %26 = arith.muli %c0_i32_11, %c1_i32_12 : i32
    %c0_i32_13 = arith.constant 0 : i32
    %27 = arith.addi %c0_i32_13, %26 : i32
    %c8_i32_14 = arith.constant 8 : i32
    %28 = arith.muli %27, %c8_i32_14 : i32
    %29 = tpu.assume_multiple %28, 8 : i32
    %c0_15 = arith.constant 0 : index
    %30 = arith.index_cast %29 : i32 to index
    %c0_16 = arith.constant 0 : index
    %31 = vector.load %arg1[%c0_15, %30, %c0_16] : memref<1x8x128xf32, #tpu.memory_space<vmem>>, vector<1x8x128xf32>
    %32 = vector.shape_cast %31 : vector<1x8x128xf32> to vector<8x128xf32>
    %33 = arith.index_cast %29 : i32 to index
    %c0_17 = arith.constant 0 : index
    %34 = vector.load %arg2[%33, %c0_17] : memref<8x1xf32, #tpu.memory_space<vmem>>, vector<8x1xf32>
    %35 = vector.broadcast %25 : f32 to vector<8x1xf32>
    %36 = arith.mulf %34, %35 : vector<8x1xf32>
    %37 = arith.index_cast %29 : i32 to index
    %c0_18 = arith.constant 0 : index
    %38 = vector.load %arg3[%37, %c0_18] : memref<8x1xf32, #tpu.memory_space<vmem>>, vector<8x1xf32>
    %39 = vector.broadcast %10 : f32 to vector<8x1xf32>
    %40 = arith.mulf %39, %36 : vector<8x1xf32>
    %41 = arith.subf %38, %40 : vector<8x1xf32>
    %42 = vector.broadcast %36 : vector<8x1xf32> to vector<8x128xf32>
    %43 = arith.mulf %32, %42 : vector<8x128xf32>
    %44 = vector.broadcast %41 : vector<8x1xf32> to vector<8x128xf32>
    %45 = arith.addf %43, %44 : vector<8x128xf32>
    %c0_19 = arith.constant 0 : index
    %46 = arith.index_cast %29 : i32 to index
    %c0_20 = arith.constant 0 : index
    %47 = vector.load %arg4[%c0_19, %46, %c0_20] : memref<1x8x128xf32, #tpu.memory_space<vmem>>, vector<1x8x128xf32>
    %48 = vector.shape_cast %47 : vector<1x8x128xf32> to vector<8x128xf32>
    %49 = vector.shape_cast %45 : vector<8x128xf32> to vector<1x8x128xf32>
    tpu.vector_store %arg4[%c0_19, %46, %c0_20], %49 {strides = array<i32>} : memref<1x8x128xf32, #tpu.memory_space<vmem>>, vector<1x8x128xf32>,
    %c1_i32_21 = arith.constant 1 : i32
    return
  }
  func.func @transform_0(%arg0: i32) -> (i32, i32, i32) {
    %c0_i32 = arith.constant 0 : i32
    %c0_i32_0 = arith.constant 0 : i32
    %c0_i32_1 = arith.constant 0 : i32
    return %arg0, %c0_i32, %c0_i32_0 : i32, i32, i32
  }
  func.func @transform_1(%arg0: i32) -> (i32, i32) {
    %c0_i32 = arith.constant 0 : i32
    %c0_i32_0 = arith.constant 0 : i32
    %c0_i32_1 = arith.constant 0 : i32
    return %c0_i32, %c0_i32_0 : i32, i32
  }
  func.func @transform_2(%arg0: i32) -> (i32, i32) {
    %c0_i32 = arith.constant 0 : i32
    %c0_i32_0 = arith.constant 0 : i32
    %c0_i32_1 = arith.constant 0 : i32
    return %c0_i32, %c0_i32_0 : i32, i32
  }
  func.func @transform_3(%arg0: i32) -> (i32, i32, i32) {
    %c0_i32 = arith.constant 0 : i32
    %c0_i32_0 = arith.constant 0 : i32
    %c0_i32_1 = arith.constant 0 : i32
    return %arg0, %c0_i32, %c0_i32_0 : i32, i32, i32
  }
}

</mosaic_0001>

<bundles_post_ra>
// kernel: tpu_custom_call.1
= control target key start
LH: loop header
LB: loop body
LE: loop exit
PB: predicated region body
PF: predicated region fallthrough
CT: control target
= control target key end

     0   :  { %8 = vsyncpa [#allocation3], 0  ;;  %s543_s0 = inlined_call_operand.vmem [shape: f32[2,8,128], index: 0, kind: input, shape index: {}]   ;;  %s544_s1 = inlined_call_operand.vmem [shape: f32[8,1], index: 1, kind: input, shape index: {}]   ;;  %s545_s2 = inlined_call_operand.vmem [shape: f32[8,1], index: 2, kind: input, shape index: {}]   ;;  %s546_s3 = inlined_call_operand.hbm [shape: f32[2,8,128], index: 3, kind: output, shape index: {}]  }
   0x1   :  { %10 = vsyncpa [#allocation3 + $0x1], 0  ;;  %s437_s12 = smov 0   ;;  %s439_s13 = smov 0  }
   0x2   :  { %s441_s14 = smov 0   ;;  %s443_s15 = smov 0  }
   0x3 LB: > { %s458_s16 = sadd.s32 4294967295, %s413_s15   ;;  %s291_s17 = sadd.s32 4294967294, %s413_s15   ;;  %s413_s15 = sphi %s443_s15, %s552_s15   ;;  %s409_s14 = sphi %s441_s14, %s551_s14   ;;  %s405_s13 = sphi %s439_s13, %s550_s13   ;;  %s401_s12 = sphi %s437_s12, %s549_s12  }
   0x4   : > { %s462_s18 = sadd.s32 1, %s413_s15   ;;  %s91_s19 = sadd.s32 1, %s409_s14 }
   0x5   : > { %s88_s20 = ssub.s32 %s413_s15, %s462_s18  ;;  %p101_p0 = scmp.ne.s32.totalorder %s409_s14, %s405_s13 }
   0x6   : > { %p89_p1 = scmp.eq.s32.totalorder %s88_s20, 0  ;;  %p102_p2 = scmp.eq.s32.totalorder %s458_s16, 1 }
   0x7   : > { %p107_p3 = scmp.ne.s32.totalorder %s405_s13, %s401_s12  ;;  %p108_p4 = scmp.eq.s32.totalorder %s291_s17, 1 }
   0x8   : > { %s473_s21 = scalar_select %p89_p1, %s409_s14, %s91_s19  }
   0x9   : > { %p475_p5 = por %p102_p2, %p101_p0  ;;  %p479_p6 = por %p108_p4, %p107_p3 }
   0xa   : > { %p294_p7 = scmp.ge.s32.totalorder %s413_s15, 1  ;;  %p139_p8 = scmp.lt.s32.totalorder %s413_s15, 3 }
   0xc   : > { %p140_p9 = pnand %p294_p7, %p139_p8 }
   0xd   : > { %p162_p10 = scmp.lt.s32.totalorder (!%p140_p9), %s458_s16, 1  ;;  %v415_v13 = vmov (!%p140_p9), 0   ;;  %v199_v21 = vld [vmem:[%s544_s1] sm:$0xff] (!%p140_p9)  ;;  %s159_s11 = sand.u32 (!%p140_p9), 1, %s405_s13  }
   0xe   : > { %143 = sbr.rel (%p140_p9) target bundleno = 656 (0x290), region = 32  ;;  %347 = vset.pattern.permute.xlu1 (!%p140_p9), %v415_v13  ;;  %348 = vset.pattern.permute.xlu0 (!%p140_p9), %v415_v13  ;;  %v202_v24 = vld [vmem:[%s545_s2] sm:$0xff] (!%p140_p9)  ;;  %s295_s17 = sshll.u32 (!%p140_p9), %s159_s11, 3 }
   0xf   : > { %s298_s19 = sshll.u32 (!%p140_p9), %s458_s16, 7  ;;  %s161_s20 = scalar_lea.vmem (!%p140_p9), [#allocation2], %s295_s17 }
  0x10   : > { %s501_s27 = scalar_lea.hbm (!%p140_p9), %s546_s3, %s298_s19 }
  0x15   : > { %s163_s24 = scalar_select %p162_p10, %s458_s16, 1 }
  0x16   : > { %s416_s16 = smov [#allocation2]  }
  0x17   : > { %s296_s25 = sshll.u32 %s163_s24, 3  ;;  %s232_s24 = sshll.u32 %s161_s20, 4  ;;  %s503_s24 = int_to_ptr.vmem [resolvable:$true] %s232_s24 }
  0x18   : > { %s165_s28 = scalar_lea.vmem %s543_s0, %s296_s25 }
  0x19   : > { %v166_v0 = vld [vmem:[%s165_s28] sm:$0xff]  ;;  %s219_s28 = scalar_lea.sflag [#allocation3], %s159_s11 }
  0x1a   : > { %167 = vadd.xlane.f32.xlu0 %v166_v0 }
  0xa7   : > { %v168_v1 = vpop.xlane.xlu0 %167 }
  0xa8   : > { %v169_v2 = vrot.slane %v168_v1, 4 }
  0xaa   : > { %v170_v3 = vadd.f32 %v169_v2, %v168_v1 }
  0xac   : > { %v171_v4 = vrot.slane %v170_v3, 2 }
  0xae   : > { %v172_v5 = vadd.f32 %v171_v4, %v170_v3 }
  0xb0   : > { %v173_v6 = vrot.slane %v172_v5, 1 }
  0xb2   : > { %v174_v7 = vadd.f32 %v173_v6, %v172_v5 }
  0xb4   : > { %301 = vpush %v174_v7 }
  0xe5   : > { %s302_s29 = spop %301 }
  0xe6   : > { %s179_s30 = smul.f32 0.0009765625, %s302_s29  ;;  %s351_s29 = scalar_lea.vmem %s503_s24, 128 }
  0xe7   : > { %p352_p11 = scmp.ne.s32.totalorder %s503_s24, %s351_s29 }
  0xe8   : > { %v180_v8 = vstv %s179_s30  ;;  %s355_s30 = sshll.u32 %s416_s16, 4  ;;  %s356_s30 = int_to_ptr.vmem [resolvable:$false] %s355_s30 }
  0xe9   : > { %v181_v9 = vsub.f32 %v166_v0, %v180_v8  ;;  %p353_p12 = pnand %p352_p11, %p475_p5  ;;  %p358_p0 = scmp.lt.s32.totalorder %s503_s24, %s356_s30 }
  0xeb   : > { %v182_v10 = vmul.f32 %v181_v9, %v181_v9  ;;  %p354_p13 = pneg %p353_p12 }
  0xed   : > { %183 = vadd.xlane.f32.xlu0 %v182_v10 }
 0x17a   : > { %v184_v11 = vpop.xlane.xlu0 %183 }
 0x17b   : > { %v185_v12 = vrot.slane %v184_v11, 4 }
 0x17d   : > { %v186_v14 = vadd.f32 %v185_v12, %v184_v11 }
 0x17f   : > { %v187_v15 = vrot.slane %v186_v14, 2 }
 0x181   : > { %v188_v16 = vadd.f32 %v187_v15, %v186_v14 }
 0x183   : > { %v189_v17 = vrot.slane %v188_v16, 1 }
 0x185   : > { %v190_v18 = vadd.f32 %v189_v17, %v188_v16 }
 0x187   : > { %303 = vpush %v190_v18 }
 0x1b8   : > { %s304_s4 = spop %303 }
 0x1b9   : > { %s195_s5 = smul.f32 0.0009775171, %s304_s4  ;;  %s357_s4 = scalar_lea.vmem %s356_s30, 256 }
 0x1ba   : > { %p359_p1 = scmp.lt.s32.totalorder %s357_s4, %s351_s29 }
 0x1bb   : > { %v196_v19 = vstv %s195_s5 }
 0x1bc   : > { %349 = vrsqrt.f32 %v196_v19  ;;  %p360_p2 = por %p359_p1, %p358_p0 }
 0x1be   : > { %p361_p3 = pnand %p360_p2, %p354_p13 }
 0x1c6   : > { %v350_v20 = vpop.eup %349 }
 0x1c7   : > { %305 = vpush %v350_v20 }
 0x1f8   : > { %s306_s8 = spop %305 }
 0x1f9   : > { %v200_v22 = vstv %s306_s8 }
 0x1fa   : > { %v201_v23 = vmul.f32 %v200_v22, %v199_v21 }
 0x1fc   : > { %v203_v25 = vmul.f32 %v201_v23, %v180_v8  ;;  %207 = vperm.xlu1 %347, %v201_v23  }
 0x1fe   : > { %v204_v26 = vsub.f32 %v202_v24, %v203_v25 }
 0x200   : > { %213 = vperm.xlu1 %347, %v204_v26  }
 0x27b   : > { %v208_v27 = vpop.permute.xlu1 %207 }
 0x27c   : > { %v210_v28 = vmul.f32 %v208_v27, %v166_v0 }
 0x27f   : > { %v214_v29 = vpop.permute.xlu1 %213 }
 0x280   : > { %v216_v30 = vadd.f32 %v214_v29, %v210_v28 }
 0x282   : > { %217 = vst [vmem:[%s161_s20] sm:$0xff] %v216_v30 }
 0x283   : > { %364 = shalt.err (!%p361_p3)
}
 0x284   : > { %s365_s5 = scalar_lea.hbm %s501_s27, 128  ;;  %s369_s8 = scalar_lea.hbm %s546_s3, 256 }
 0x285   : > { %p366_p4 = scmp.ne.s32.totalorder %s501_s27, %s365_s5  ;;  %p370_p9 = scmp.lt.u32.totalorder %s501_s27, %s546_s3 }
 0x286   : > { %p371_p10 = scmp.lt.u32.totalorder %s369_s8, %s365_s5  ;;  %p373_p12 = scmp.lt.u32.totalorder %s365_s5, %s501_s27 }
 0x287   : > { %p367_p7 = pnand %p366_p4, %p475_p5 }
 0x288   : > { %p372_p11 = por %p371_p10, %p370_p9 }
 0x289   : > { %p368_p8 = pneg %p367_p7 }
 0x28a   : > { %p374_p13 = por %p373_p12, %p372_p11 }
 0x28c   : > { %p375_p0 = pnand %p374_p13, %p368_p8 }
 0x28e   : > { %378 = shalt.err (!%p375_p0)
}
 0x28f   : > { %307 = dma.vmem_to_hbm [thread:$0]  (%p475_p5), %s503_s24, 128, %s501_s27, %s219_s28  }
 0x290 PF: > { %p313_p1 = scmp.ge.s32.totalorder %s413_s15, 2  ;;  %s244_s11 = sand.u32 1, %s401_s12  }
 0x291   : > { %s245_s17 = scalar_lea.sflag [#allocation3], %s244_s11 }
 0x292   : > { %p310_p2 = pnand %p313_p1, %p479_p6 }
 0x294   : > { %396 = dma.done.wait (!%p310_p2), %s245_s17, 128  }
 0x295   : > { %398 = vsyncadd (!%p310_p2), %s245_s17, 4294967168  ;;  %p13_p3 = scmp.ge.s32.totalorder %s462_s18, 4   ;;  %s549_s12 = smov %s405_s13 }
 0x296   : > { %s550_s13 = smov %s409_s14  ;;  %s551_s14 = smov %s473_s21 }
 0x297   : > { %s552_s15 = smov %s462_s18  ;;  %15 = sbr.rel (!%p13_p3) target bundleno = 3 (0x3), region = 67 }
 0x29e   :  { %250 = vsyncpa [#allocation3], 1 }
 0x29f   :  { %252 = vsyncpa [#allocation3 + $0x1], 1 }

</bundles_post_ra>
